<compile_context>
chip_gen: v5e
topology: v5e:2x2
jax: 0.10.0
libtpu: 0.0.40
codegen_flags: <defaults>
</compile_context>

<pallas_src>
import functools

import jax
import jax.numpy as jnp
from jax import lax
from jax.experimental import pallas as pl
from jax.experimental.pallas import tpu as pltpu


def _keep_mask(m_ref, f_ref):
    """(P, HW) float32 keep-mask: 1.0 where the bs x bs window holds no seed."""
    m = m_ref[...].astype(jnp.float32)                # int8 -> f32, once
    msum = jnp.dot(m, f_ref[...], preferred_element_type=jnp.float32)
    return (msum < 1.0).astype(jnp.float32)           # counts are exact in f32


def _count_kernel(m_ref, f_ref, cnt_ref, *, rows_per_block, n_rows):
    """Pass 1: per-block count of kept elements -> SMEM scalar."""
    keep = _keep_mask(m_ref, f_ref)
    if n_rows % rows_per_block != 0:
        # Mask rows of the (partial) last block that lie past the array edge.
        base = pl.program_id(0) * rows_per_block
        row = lax.broadcasted_iota(jnp.int32, keep.shape, 0)
        keep = jnp.where(base + row < n_rows, keep, 0.0)
    cnt_ref[0, 0] = jnp.sum(keep)


def _apply_kernel(scale_ref, x_ref, m_ref, f_ref, y_ref):
    """Pass 2: y = x * mask * (numel / total), written directly."""
    keep = _keep_mask(m_ref, f_ref)
    x = x_ref[...].astype(jnp.float32)
    y_ref[...] = (x * keep * scale_ref[0]).astype(y_ref.dtype)


def _rows_per_block(n_rows, hw):
    # Keep each f32 plane-sized intermediate <= ~2 MiB; with several live at
    # once plus double-buffered input tiles this stays comfortably inside
    # v7x's 64 MiB VMEM (and far inside v5e/v6e's 128 MiB).
    cap = max(32, (2 * 1024 * 1024) // (4 * hw))
    if n_rows <= cap:
        return n_rows                 # block == full dim: always a legal tiling
    return (cap // 32) * 32           # multiple of 32: legal sublane tiling for int8 & f32


def dropblock2d(x, *, keep_prob=0.9, block_size=7, seed=0, training=True):
    """JAX/Pallas DropBlock2D forward. x is NCHW."""
    if (not training) or keep_prob == 1:
        return x
    if block_size % 2 == 0:
        raise ValueError("only odd block_size matches the reference 'same' conv")
    N, C, H, W = x.shape
    if H < block_size or W < block_size:
        raise ValueError("block_size must be <= spatial dims (gamma ill-defined otherwise)")

    gamma = (1.0 - keep_prob) / (block_size ** 2)
    for sh in (H, W):
        gamma *= sh / (sh - block_size + 1)

    NC, HW = N * C, H * W
    numel = float(NC * HW)
    xf = x.reshape(NC, HW)            # lane-dense: one plane per row (free reshape)

    # Bernoulli seed map (see TODO at top), stored as int8 to cut HBM traffic.
    key = jax.random.PRNGKey(seed)
    m = jax.random.bernoulli(key, gamma, (NC, HW)).astype(jnp.int8)

    # Banded separable box filter as one (HW, HW) matrix:
    #   F[h*W+w, h'*W+w'] = [|h-h'| <= pad] * [|w-w'| <= pad]
    # TODO(synk): for large H*W (F no longer fits VMEM) switch to the separable
    # two-matmul form (M @ B_W then the B_H filter along H) on (P, H, W) blocks.
    pad = block_size // 2
    ih = jnp.arange(H)
    iw = jnp.arange(W)
    bh = (jnp.abs(ih[:, None] - ih[None, :]) <= pad).astype(jnp.float32)
    bw = (jnp.abs(iw[:, None] - iw[None, :]) <= pad).astype(jnp.float32)
    filt = jnp.kron(bh, bw)           # (HW, HW) f32

    P = _rows_per_block(NC, HW)
    nblk = pl.cdiv(NC, P)

    row_map = lambda i: (i, 0)
    filt_spec = pl.BlockSpec((HW, HW), lambda i: (0, 0))

    # ---- Pass 1: per-block kept-element counts (SMEM scalars). ----
    counts = pl.pallas_call(
        functools.partial(_count_kernel, rows_per_block=P, n_rows=NC),
        out_shape=jax.ShapeDtypeStruct((nblk, 1), jnp.float32),
        grid_spec=pltpu.PrefetchScalarGridSpec(
            num_scalar_prefetch=0,
            grid=(nblk,),
            in_specs=[pl.BlockSpec((P, HW), row_map), filt_spec],
            out_specs=pl.BlockSpec((1, 1), row_map, memory_space=pltpu.SMEM),
        ),
        compiler_params=pltpu.CompilerParams(dimension_semantics=("parallel",)),
    )(m, filt)

    total = jnp.sum(counts)                                   # mask.sum()
    scale = (numel / total).astype(jnp.float32).reshape(1)    # mask.numel()/mask.sum()

    # ---- Pass 2: out = x * mask * scale, written directly. ----
    yf = pl.pallas_call(
        _apply_kernel,
        out_shape=jax.ShapeDtypeStruct((NC, HW), x.dtype),
        grid_spec=pltpu.PrefetchScalarGridSpec(
            num_scalar_prefetch=0,
            grid=(nblk,),
            in_specs=[
                pl.BlockSpec(memory_space=pltpu.SMEM),   # scale, (1,) f32 scalar
                pl.BlockSpec((P, HW), row_map),          # x
                pl.BlockSpec((P, HW), row_map),          # Bernoulli seeds (int8)
                filt_spec,                               # banded filter matrix
            ],
            out_specs=pl.BlockSpec((P, HW), row_map),
        ),
        compiler_params=pltpu.CompilerParams(dimension_semantics=("parallel",)),
    )(scale, xf, m, filt)

    return yf.reshape(N, C, H, W)


if __name__ == "__main__":
    key = jax.random.PRNGKey(0)
    x = jax.random.normal(key, (2, 4, 16, 16), dtype=jnp.float32)

    out = dropblock2d(x, keep_prob=0.9, block_size=7, seed=0, training=True)
    out = jax.block_until_ready(out)

    assert out.shape == x.shape and out.dtype == x.dtype
    assert bool(jnp.all(jnp.isfinite(out)))

    # eval mode / keep_prob == 1 pass-through
    out_eval = jax.block_until_ready(dropblock2d(x, training=False))
    assert bool(jnp.all(out_eval == x))

    print("KERNEL_OK")
</pallas_src>

<mosaic_0001>
module attributes {stable_mosaic.version = 11 : i64} {
  func.func @_count_kernel(%arg0: i32, %arg1: memref<8x256xi8, #tpu.memory_space<vmem>>, %arg2: memref<256x256xf32, #tpu.memory_space<vmem>>, %arg3: memref<1x1xf32, #tpu.memory_space<smem>>) attributes {dimension_semantics = [#tpu.dimension_semantics<parallel>], iteration_bounds = array<i64: 1>, scalar_prefetch = 0 : i64, scratch_operands = 0 : i64, tpu.core_type = #tpu.core_type<tc>, window_params = [{transform_indices = @transform_0, window_bounds = array<i64: 8, 256>}, {pipeline_mode = #tpu.pipeline_mode<synchronous>, transform_indices = @transform_1, window_bounds = array<i64: 256, 256>}, {transform_indices = @transform_2, window_bounds = array<i64: 1, 1>}]} {
    %c0 = arith.constant 0 : index
    %c0_0 = arith.constant 0 : index
    %0 = vector.load %arg1[%c0, %c0_0] : memref<8x256xi8, #tpu.memory_space<vmem>>, vector<8x256xi8>
    %1 = arith.sitofp %0 : vector<8x256xi8> to vector<8x256xf32>
    %c0_1 = arith.constant 0 : index
    %c0_2 = arith.constant 0 : index
    %2 = vector.load %arg2[%c0_1, %c0_2] : memref<256x256xf32, #tpu.memory_space<vmem>>, vector<256x256xf32>
    %cst = arith.constant dense<0.000000e+00> : vector<8x256xf32>
    %3 = tpu.matmul %1, %2, %cst {dimension_numbers = #tpu.dot_dimension_numbers<[1], [0], [0], [1], [0, 0, 1, 1], [], []>} : vector<8x256xf32>, vector<256x256xf32>, vector<8x256xf32> -> vector<8x256xf32>
    %cst_3 = arith.constant 1.000000e+00 : f32
    %4 = vector.broadcast %cst_3 : f32 to vector<8x256xf32>
    %5 = arith.cmpf olt, %3, %4 : vector<8x256xf32>
    %6 = arith.extui %5 : vector<8x256xi1> to vector<8x256xi32>
    %7 = arith.sitofp %6 : vector<8x256xi32> to vector<8x256xf32>
    %8 = vector.shape_cast %7 : vector<8x256xf32> to vector<1x8x256xf32>
    %cst_4 = arith.constant dense<0.000000e+00> : vector<1xf32>
    %9 = vector.multi_reduction <add>, %8, %cst_4 [1, 2] : vector<1x8x256xf32> to vector<1xf32>
    %10 = vector.shape_cast %9 : vector<1xf32> to vector<1x1x1xf32>
    %11 = vector.extract %10[0, 0, 0] : f32 from vector<1x1x1xf32>
    %c0_5 = arith.constant 0 : index
    %c0_6 = arith.constant 0 : index
    %12 = memref.load %arg3[%c0_5, %c0_6] : memref<1x1xf32, #tpu.memory_space<smem>>
    memref.store %11, %arg3[%c0_5, %c0_6] : memref<1x1xf32, #tpu.memory_space<smem>>
    return
  }
  func.func @transform_0(%arg0: i32) -> (i32, i32) {
    %c0_i32 = arith.constant 0 : i32
    %c0_i32_0 = arith.constant 0 : i32
    return %arg0, %c0_i32 : i32, i32
  }
  func.func @transform_1(%arg0: i32) -> (i32, i32) {
    %c0_i32 = arith.constant 0 : i32
    %c0_i32_0 = arith.constant 0 : i32
    %c0_i32_1 = arith.constant 0 : i32
    return %c0_i32, %c0_i32_0 : i32, i32
  }
  func.func @transform_2(%arg0: i32) -> (i32, i32) {
    %c0_i32 = arith.constant 0 : i32
    %c0_i32_0 = arith.constant 0 : i32
    return %arg0, %c0_i32 : i32, i32
  }
}

</mosaic_0001>

<bundles_post_ra>
// kernel: tpu_custom_call.1
= control target key start
LH: loop header
LB: loop body
LE: loop exit
PB: predicated region body
PF: predicated region fallthrough
CT: control target
= control target key end

     0   :  { %7 = vsyncpa [#allocation3], 0  ;;  %s332_s0 = inlined_call_operand.hbm [shape: s8[8,256], index: 0, kind: input, shape index: {}]   ;;  %s333_s1 = inlined_call_operand.hbm [shape: f32[256,256], index: 1, kind: input, shape index: {}]   ;;  %s334_s2 = inlined_call_operand.hbm [shape: f32[1,1], index: 2, kind: output, shape index: {}]  }
   0x1   :  { %8 = vsyncpa [#allocation6], 0 }
   0x2   :  { %9 = vsyncpa [#allocation4], 0  ;;  %s15_s11 = sshll.u32 %s332_s0, 4  ;;  %s302_s12 = smov [#allocation2]   ;;  %s16_s11 = int_to_ptr.hbm [resolvable:$true] %s15_s11 }
   0x3   :  { %s17_s13 = sshll.u32 %s302_s12, 4  ;;  %s25_s16 = sshll.u32 %s333_s1, 4  ;;  %s18_s13 = int_to_ptr.vmem [resolvable:$true] %s17_s13  ;;  %s26_s16 = int_to_ptr.hbm [resolvable:$true] %s25_s16 }
   0x4   :  { %20 = dma.hbm_to_vmem [thread:$0]  %s16_s11, 64, %s18_s13, [#allocation3]  }
   0x5   :  { %s303_s17 = smov [#allocation5]   ;;  %s304_s19 = smov 256  }
   0x6   :  { %s27_s18 = sshll.u32 %s303_s17, 4  ;;  %s305_s20 = smov 16   ;;  %s28_s18 = int_to_ptr.vmem [resolvable:$true] %s27_s18 }
   0x7   :  { %33 = dma.hbm_to_vmem [thread:$0]  %s26_s16, 8192, %s28_s18, [#allocation6], %s304_s19, %s304_s19, %s305_s20  }
   0x8   :  { %296 = dma.done.wait [#allocation3], 64  }
   0x9   :  { %297 = vsyncadd [#allocation3], 4294967232 }
   0xa   :  { %298 = dma.done.wait [#allocation6], 8192  }
   0xb   :  { %299 = vsyncadd [#allocation6], 4294959104  ;;  %v78_v0 = vld [vmem:[#allocation5 + $0xf8] sm:$0xff]  ;;  %v76_v2 = vld [vmem:[#allocation5 + $0xe8] sm:$0xff]  ;;  %s214_s21 = sshll.u32 %s334_s2, 4  ;;  %s307_s23 = smov [#allocation7]   ;;  %s215_s21 = int_to_ptr.hbm [resolvable:$true] %s214_s21 }
   0xc   :  { %v110_v1 = vld [vmem:[#allocation5 + $0x1f8] sm:$0xff]  ;;  %151 = vmatpush.msra.mxu2 %v78_v0  ;;  %v108_v3 = vld [vmem:[#allocation5 + $0x1e8] sm:$0xff]  ;;  %v77_v6 = vld [vmem:[#allocation5 + $0xf0] sm:$0xff] }
   0xd   :  { %171 = vmatpush.msra.mxu3 %v110_v1  ;;  %v74_v4 = vld [vmem:[#allocation5 + $0xd8] sm:$0xff]  ;;  %v109_v7 = vld [vmem:[#allocation5 + $0x1f0] sm:$0xff]  ;;  %v75_v8 = vld [vmem:[#allocation5 + $0xe0] sm:$0xff]  ;;  %111 = vmatpush.msra.mxu0 %v77_v6 }
   0xe   :  { %v106_v5 = vld [vmem:[#allocation5 + $0x1d8] sm:$0xff]  ;;  %152 = vmatpush.msra.mxu2 %v76_v2  ;;  %v107_v9 = vld [vmem:[#allocation5 + $0x1e0] sm:$0xff]  ;;  %131 = vmatpush.msra.mxu1 %v109_v7  ;;  %v72_v10 = vld [vmem:[#allocation5 + $0xc8] sm:$0xff] }
   0xf   :  { %172 = vmatpush.msra.mxu3 %v108_v3  ;;  %v104_v11 = vld [vmem:[#allocation5 + $0x1c8] sm:$0xff]  ;;  %v73_v12 = vld [vmem:[#allocation5 + $0xd0] sm:$0xff]  ;;  %112 = vmatpush.msra.mxu0 %v75_v8  ;;  %v70_v14 = vld [vmem:[#allocation5 + $0xb8] sm:$0xff] }
  0x10   :  { %153 = vmatpush.msra.mxu2 %v74_v4  ;;  %v105_v13 = vld [vmem:[#allocation5 + $0x1d0] sm:$0xff]  ;;  %132 = vmatpush.msra.mxu1 %v107_v9  ;;  %v102_v15 = vld [vmem:[#allocation5 + $0x1b8] sm:$0xff]  ;;  %v71_v16 = vld [vmem:[#allocation5 + $0xc0] sm:$0xff] }
  0x11   :  { %173 = vmatpush.msra.mxu3 %v106_v5  ;;  %v103_v17 = vld [vmem:[#allocation5 + $0x1c0] sm:$0xff]  ;;  %113 = vmatpush.msra.mxu0 %v73_v12  ;;  %v68_v18 = vld [vmem:[#allocation5 + $0xa8] sm:$0xff]  ;;  %v69_v20 = vld [vmem:[#allocation5 + $0xb0] sm:$0xff] }
  0x12   :  { %154 = vmatpush.msra.mxu2 %v72_v10  ;;  %133 = vmatpush.msra.mxu1 %v105_v13  ;;  %v100_v19 = vld [vmem:[#allocation5 + $0x1a8] sm:$0xff]  ;;  %v101_v21 = vld [vmem:[#allocation5 + $0x1b0] sm:$0xff]  ;;  %v66_v22 = vld [vmem:[#allocation5 + $0x98] sm:$0xff] }
  0x13   :  { %174 = vmatpush.msra.mxu3 %v104_v11  ;;  %114 = vmatpush.msra.mxu0 %v71_v16  ;;  %v98_v23 = vld [vmem:[#allocation5 + $0x198] sm:$0xff]  ;;  %v67_v24 = vld [vmem:[#allocation5 + $0xa0] sm:$0xff]  ;;  %v64_v26 = vld [vmem:[#allocation5 + $0x88] sm:$0xff]  ;;  %v306_v11 = vmov 0.0  }
  0x14   :  { %155 = vmatpush.msra.mxu2 %v70_v14  ;;  %134 = vmatpush.msra.mxu1 %v103_v17  ;;  %v99_v25 = vld [vmem:[#allocation5 + $0x1a0] sm:$0xff]  ;;  %v96_v27 = vld [vmem:[#allocation5 + $0x188] sm:$0xff]  ;;  %v65_v28 = vld [vmem:[#allocation5 + $0x90] sm:$0xff] }
  0x15   :  { %175 = vmatpush.msra.mxu3 %v102_v15  ;;  %115 = vmatpush.msra.mxu0 %v69_v20  ;;  %v97_v29 = vld [vmem:[#allocation5 + $0x190] sm:$0xff]  ;;  %v62_v30 = vld [vmem:[#allocation5 + $0x78] sm:$0xff]  ;;  %v63_v32 = vld [vmem:[#allocation5 + $0x80] sm:$0xff] }
  0x16   :  { %156 = vmatpush.msra.mxu2 %v68_v18  ;;  %135 = vmatpush.msra.mxu1 %v101_v21  ;;  %v94_v31 = vld [vmem:[#allocation5 + $0x178] sm:$0xff]  ;;  %v95_v33 = vld [vmem:[#allocation5 + $0x180] sm:$0xff]  ;;  %v60_v34 = vld [vmem:[#allocation5 + $0x68] sm:$0xff] }
  0x17   :  { %176 = vmatpush.msra.mxu3 %v100_v19  ;;  %116 = vmatpush.msra.mxu0 %v67_v24  ;;  %v92_v35 = vld [vmem:[#allocation5 + $0x168] sm:$0xff]  ;;  %v61_v36 = vld [vmem:[#allocation5 + $0x70] sm:$0xff]  ;;  %v58_v38 = vld [vmem:[#allocation5 + $0x58] sm:$0xff] }
  0x18   :  { %157 = vmatpush.msra.mxu2 %v66_v22  ;;  %136 = vmatpush.msra.mxu1 %v99_v25  ;;  %v93_v37 = vld [vmem:[#allocation5 + $0x170] sm:$0xff]  ;;  %v90_v39 = vld [vmem:[#allocation5 + $0x158] sm:$0xff]  ;;  %v59_v40 = vld [vmem:[#allocation5 + $0x60] sm:$0xff] }
  0x19   :  { %177 = vmatpush.msra.mxu3 %v98_v23  ;;  %117 = vmatpush.msra.mxu0 %v65_v28  ;;  %v91_v41 = vld [vmem:[#allocation5 + $0x160] sm:$0xff]  ;;  %v56_v42 = vld [vmem:[#allocation5 + $0x48] sm:$0xff]  ;;  %v57_v44 = vld [vmem:[#allocation5 + $0x50] sm:$0xff] }
  0x1a   :  { %158 = vmatpush.msra.mxu2 %v64_v26  ;;  %137 = vmatpush.msra.mxu1 %v97_v29  ;;  %v88_v43 = vld [vmem:[#allocation5 + $0x148] sm:$0xff]  ;;  %v89_v45 = vld [vmem:[#allocation5 + $0x150] sm:$0xff]  ;;  %v42_v46 = vld [vmem:[#allocation2] sm:$0xf] }
  0x1b   :  { %178 = vmatpush.msra.mxu3 %v96_v27  ;;  %118 = vmatpush.msra.mxu0 %v63_v32  ;;  %v54_v47 = vld [vmem:[#allocation5 + $0x38] sm:$0xff]  ;;  %v55_v49 = vld [vmem:[#allocation5 + $0x40] sm:$0xff]  ;;  %v52_v51 = vld [vmem:[#allocation5 + $0x28] sm:$0xff]  ;;  %v43_v53 = vunpack.c.0.s8 %v42_v46  ;;  %v44_v54 = vunpack.c.1.s8 %v42_v46 }
  0x1c   :  { %159 = vmatpush.msra.mxu2 %v62_v30  ;;  %138 = vmatpush.msra.mxu1 %v95_v33  ;;  %v86_v48 = vld [vmem:[#allocation5 + $0x138] sm:$0xff]  ;;  %v87_v50 = vld [vmem:[#allocation5 + $0x140] sm:$0xff]  ;;  %v84_v52 = vld [vmem:[#allocation5 + $0x128] sm:$0xff] }
  0x1d   :  { %179 = vmatpush.msra.mxu3 %v94_v31  ;;  %119 = vmatpush.msra.mxu0 %v61_v36  ;;  %v53_v55 = vld [vmem:[#allocation5 + $0x30] sm:$0xff]  ;;  %v50_v57 = vld [vmem:[#allocation5 + $0x18] sm:$0xff]  ;;  %v51_v59 = vld [vmem:[#allocation5 + $0x20] sm:$0xff]  ;;  %v45_v63 = vcvt.s32.f32 %v43_v53  ;;  %v46_v0 = vcvt.s32.f32 %v44_v54 }
  0x1e   :  { %160 = vmatpush.msra.mxu2 %v60_v34  ;;  %139 = vmatpush.msra.mxu1 %v93_v37  ;;  %v85_v56 = vld [vmem:[#allocation5 + $0x130] sm:$0xff]  ;;  %v82_v58 = vld [vmem:[#allocation5 + $0x118] sm:$0xff]  ;;  %v83_v60 = vld [vmem:[#allocation5 + $0x120] sm:$0xff] }
  0x1f   :  { %180 = vmatpush.msra.mxu3 %v92_v35  ;;  %120 = vmatpush.msra.mxu0 %v59_v40  ;;  %v48_v61 = vld [vmem:[#allocation5 + $0x8] sm:$0xff]  ;;  %v49_v1 = vld [vmem:[#allocation5 + $0x10] sm:$0xff]  ;;  %v47_v3 = vld [vmem:[#allocation5] sm:$0xff] }
  0x20   :  { %161 = vmatpush.msra.mxu2 %v58_v38  ;;  %140 = vmatpush.msra.mxu1 %v91_v41  ;;  %v80_v62 = vld [vmem:[#allocation5 + $0x108] sm:$0xff]  ;;  %v81_v2 = vld [vmem:[#allocation5 + $0x110] sm:$0xff]  ;;  %v79_v4 = vld [vmem:[#allocation5 + $0x100] sm:$0xff] }
  0x21   :  { %181 = vmatpush.msra.mxu3 %v90_v39  ;;  %121 = vmatpush.msra.mxu0 %v57_v44 }
  0x22   :  { %162 = vmatpush.msra.mxu2 %v56_v42  ;;  %141 = vmatpush.msra.mxu1 %v89_v45 }
  0x23   :  { %182 = vmatpush.msra.mxu3 %v88_v43  ;;  %122 = vmatpush.msra.mxu0 %v55_v49 }
  0x24   :  { %163 = vmatpush.msra.mxu2 %v54_v47  ;;  %142 = vmatpush.msra.mxu1 %v87_v50 }
  0x25   :  { %183 = vmatpush.msra.mxu3 %v86_v48  ;;  %123 = vmatpush.msra.mxu0 %v53_v55 }
  0x26   :  { %164 = vmatpush.msra.mxu2 %v52_v51  ;;  %143 = vmatpush.msra.mxu1 %v85_v56 }
  0x27   :  { %184 = vmatpush.msra.mxu3 %v84_v52  ;;  %124 = vmatpush.msra.mxu0 %v51_v59 }
  0x28   :  { %165 = vmatpush.msra.mxu2 %v50_v57  ;;  %144 = vmatpush.msra.mxu1 %v83_v60 }
  0x29   :  { %185 = vmatpush.msra.mxu3 %v82_v58  ;;  %125 = vmatpush.msra.mxu0 %v49_v1 }
  0x2a   :  { %166 = vmatpush.msra.mxu2 %v48_v61  ;;  %145 = vmatpush.msra.mxu1 %v81_v2 }
  0x2b   :  { %186 = vmatpush.msra.mxu3 %v80_v62  ;;  %167 = vmatmul.f32.vlgmr.msra.gmra.mxu2 %v45_v63 }
  0x2c   :  { %187 = vmatmul.f32.vlgmr.msra.gmra.mxu3 %v46_v0  ;;  %126 = vmatpush.msra.mxu0 %v47_v3 }
  0x2d   :  { %146 = vmatpush.msra.mxu1 %v79_v4  ;;  %127 = vmatmul.f32.vlgmr.msra.gmra.mxu0 %v45_v63 }
  0x2e   :  { %147 = vmatmul.f32.vlgmr.msra.gmra.mxu1 %v46_v0 }
  0xaa   :  { %v128_v5 = vpop.f32.mrf.mxu0 }
  0xab   :  { %v148_v6 = vpop.f32.mrf.mxu1 }
  0xac   :  { %v149_v7 = vadd.f32 %v148_v6, %v128_v5 }
  0xae   :  { %v168_v8 = vpop.f32.mrf.mxu2  ;;  %vm191_vm0 = vcmp.lt.f32.partialorder %v149_v7, 1.0 }
  0xaf   :  { %v188_v9 = vpop.f32.mrf.mxu3  ;;  %v226_v12 = vsel %vm191_vm0, 1.0, %v306_v11 }
  0xb0   :  { %v189_v10 = vadd.f32 %v188_v9, %v168_v8 }
  0xb2   :  { %vm192_vm1 = vcmp.lt.f32.partialorder %v189_v10, 1.0 }
  0xb3   :  { %v227_v13 = vsel %vm192_vm1, 1.0, %v306_v11 }
  0xb4   :  { %v197_v14 = vadd.f32 %v227_v13, %v226_v12 }
  0xb6   :  { %198 = vadd.xlane.f32.xlu0 %v197_v14 }
 0x129   :  { %v199_v15 = vpop.xlane.xlu0 %198 }
 0x12a   :  { %v200_v16 = vrot.slane %v199_v15, 4 }
 0x12c   :  { %v201_v17 = vadd.f32 %v200_v16, %v199_v15 }
 0x12e   :  { %v202_v18 = vrot.slane %v201_v17, 2 }
 0x130   :  { %v203_v19 = vadd.f32 %v202_v18, %v201_v17 }
 0x132   :  { %v204_v20 = vrot.slane %v203_v19, 1 }
 0x134   :  { %v205_v21 = vadd.f32 %v204_v20, %v203_v19 }
 0x136   :  { %228 = vpush %v205_v21 }
 0x167   :  { %s229_s22 = spop %228 }
 0x168   :  { %208 = sst [smem:[#allocation7]] %s229_s22 }
 0x169   :  { %217 = dma.smem_to_hbm %s307_s23, 16, %s215_s21, [#allocation4]  }
 0x16a   :  { %300 = dma.done.wait [#allocation4], 16  }
 0x16b   :  { %301 = vsyncadd [#allocation4], 4294967280 }
 0x16c   :  { %222 = sfence }
 0x16d   :  { %223 = vsyncpa [#allocation3], 1 }
 0x16e   :  { %224 = vsyncpa [#allocation6], 1 }
 0x16f   :  { %225 = vsyncpa [#allocation4], 1 }

</bundles_post_ra>
